<compile_context>
chip_gen: v7x
topology: tpu7x:2x2x1
jax: 0.10.0
libtpu: 0.0.40
codegen_flags: <defaults>
</compile_context>

<pallas_src>
import functools

import jax
import jax.numpy as jnp
from jax.experimental import pallas as pl
from jax.experimental.pallas import tpu as pltpu


def _attention_kernel(x_ref, wq_ref, wk_ref, wv_ref, wp_ref, bp_ref, o_ref,
                      *, batch: int, num_heads: int):
    BN, C = x_ref.shape
    N = BN // batch
    H = num_heads
    hd = C // H
    scale = float(hd) ** -0.5

    xb = x_ref[...].astype(jnp.bfloat16)                      # (B*N, C)
    # Head-batched view of the activations (cheap leading-dim broadcast) so
    # every per-head matmul is a single-batch-dim dot_general.
    xh = jnp.broadcast_to(xb[None, :, :], (H, BN, C))          # (H, B*N, C)

    # Per-head Q/K/V projections: bf16 MXU operands, f32 accumulation.
    q = jnp.einsum('hnc,hcd->hnd', xh, wq_ref[...],
                   preferred_element_type=jnp.float32)         # (H, B*N, hd)
    k = jnp.einsum('hnc,hcd->hnd', xh, wk_ref[...],
                   preferred_element_type=jnp.float32)
    v = jnp.einsum('hnc,hcd->hnd', xh, wv_ref[...],
                   preferred_element_type=jnp.float32)

    bias = bp_ref[...]                                         # (1, C) f32

    # Attention core: static loop over the (tiny) batch; slices along the
    # row axis are sublane-aligned (multiples of N=8 rows), heads stay
    # batched inside einsums.
    for b in range(batch):
        rows = slice(b * N, (b + 1) * N)
        qb = q[:, rows, :].astype(jnp.bfloat16)                # (H, N, hd)
        kb = k[:, rows, :].astype(jnp.bfloat16)
        vb = v[:, rows, :].astype(jnp.bfloat16)

        # Scores without an explicit k transpose (contract last dims).
        s = jnp.einsum('hnd,hmd->hnm', qb, kb,
                       preferred_element_type=jnp.float32)     # (H, N, N)
        s = s * scale
        s = s - jnp.max(s, axis=-1, keepdims=True)
        p = jnp.exp(s)
        p = p * pl.reciprocal(jnp.sum(p, axis=-1, keepdims=True), approx=True)

        ctx = jnp.einsum('hnm,hmd->hnd', p.astype(jnp.bfloat16), vb,
                         preferred_element_type=jnp.float32)   # (H, N, hd)

        # Output projection: head-batched matmul + sum over heads
        # (no concat of per-head context tensors).
        outh = jnp.einsum('hnd,hdc->hnc', ctx.astype(jnp.bfloat16), wp_ref[...],
                          preferred_element_type=jnp.float32)  # (H, N, C)
        out = jnp.sum(outh, axis=0) + bias                     # (N, C)
        o_ref[rows, :] = out.astype(o_ref.dtype)


def attention_pallas(x, w_qkv, w_proj, b_proj, *, num_heads):
    """x: (B, N, C); w_qkv: (C, 3C) (in, out); w_proj: (C, C) (in, out);
    b_proj: (1, C)."""
    B, N, C = x.shape
    H = num_heads
    hd = C // H

    # Trace-time weight re-arrangement into head-batched layouts (done by
    # XLA outside the kernel) + bf16 cast of all MXU operands (halves the
    # weight HBM->VMEM traffic).
    def split_heads(w):                                    # (C, C) -> (H, C, hd)
        return jnp.transpose(w.reshape(C, H, hd), (1, 0, 2))

    wq_h = split_heads(w_qkv[:, 0 * C:1 * C]).astype(jnp.bfloat16)
    wk_h = split_heads(w_qkv[:, 1 * C:2 * C]).astype(jnp.bfloat16)
    wv_h = split_heads(w_qkv[:, 2 * C:3 * C]).astype(jnp.bfloat16)
    wp_h = w_proj.reshape(H, hd, C).astype(jnp.bfloat16)    # (H, hd, C)

    x2d = x.reshape(B * N, C)                               # fold batch into rows

    kernel = functools.partial(_attention_kernel, batch=B, num_heads=H)
    out2d = pl.pallas_call(
        kernel,
        out_shape=jax.ShapeDtypeStruct((B * N, C), x.dtype),
        # Single grid-less invocation: every operand lives whole in VMEM and
        # is DMA'd exactly once (no per-step weight re-fetch).
        in_specs=[pl.BlockSpec(memory_space=pltpu.MemorySpace.VMEM)] * 6,
        out_specs=pl.BlockSpec(memory_space=pltpu.MemorySpace.VMEM),
    )(x2d, wq_h, wk_h, wv_h, wp_h, b_proj)
    return out2d.reshape(B, N, C)


def attention_reference(x, w_qkv, w_proj, b_proj, *, num_heads):
    """Pure-JAX f32 reference mirroring the PyTorch forward."""
    B, N, C = x.shape
    hd = C // num_heads
    scale = float(hd) ** -0.5
    qkv = x @ w_qkv                                         # (B, N, 3C)
    qkv = qkv.reshape(B, N, 3, num_heads, hd)
    qkv = jnp.transpose(qkv, (2, 0, 3, 1, 4))               # (3, B, H, N, hd)
    q, k, v = qkv[0], qkv[1], qkv[2]
    attn = jnp.einsum("bhnd,bhmd->bhnm", q, k) * scale
    attn = jax.nn.softmax(attn, axis=-1)
    out = jnp.einsum("bhnm,bhmd->bhnd", attn, v)            # (B, H, N, hd)
    out = jnp.transpose(out, (0, 2, 1, 3)).reshape(B, N, C)
    return out @ w_proj + b_proj[0]


if __name__ == "__main__":
    # Small shapes consistent with the module: dim=32, 4 heads, head_dim=8.
    B, N, C = 2, 8, 32
    num_heads = 4

    key = jax.random.PRNGKey(0)
    kx, kq, kp, kb = jax.random.split(key, 4)

    x = jax.random.normal(kx, (B, N, C), dtype=jnp.float32)
    # Deterministic parameter init (synthetic, not a checkpoint load).
    w_qkv = jax.random.normal(kq, (C, 3 * C), dtype=jnp.float32) * 0.05
    w_proj = jax.random.normal(kp, (C, C), dtype=jnp.float32) * 0.05
    b_proj = jax.random.normal(kb, (1, C), dtype=jnp.float32) * 0.05

    out = attention_pallas(x, w_qkv, w_proj, b_proj, num_heads=num_heads)
    out = jax.block_until_ready(out)

    ref = attention_reference(x, w_qkv, w_proj, b_proj, num_heads=num_heads)
    assert out.shape == (B, N, C)
    # bf16 MXU operands + approx reciprocal -> slightly looser tolerance
    # than the pure-f32 reference.
    assert jnp.allclose(out, ref, atol=2e-2, rtol=2e-2), "mismatch vs reference"

    print("KERNEL_OK")
</pallas_src>

<mosaic_0001>
module attributes {stable_mosaic.version = 11 : i64} {
  func.func @_attention_kernel(%arg0: memref<16x32xf32, #tpu.memory_space<vmem>>, %arg1: memref<4x32x8xbf16, #tpu.memory_space<vmem>>, %arg2: memref<4x32x8xbf16, #tpu.memory_space<vmem>>, %arg3: memref<4x32x8xbf16, #tpu.memory_space<vmem>>, %arg4: memref<4x8x32xbf16, #tpu.memory_space<vmem>>, %arg5: memref<1x32xf32, #tpu.memory_space<vmem>>, %arg6: memref<16x32xf32, #tpu.memory_space<vmem>>) attributes {dimension_semantics = [], scalar_prefetch = 0 : i64, scratch_operands = 0 : i64, tpu.core_type = #tpu.core_type<tc>} {
    %c0 = arith.constant 0 : index
    %c0_0 = arith.constant 0 : index
    %0 = vector.load %arg0[%c0, %c0_0] : memref<16x32xf32, #tpu.memory_space<vmem>>, vector<16x32xf32>
    %1 = arith.truncf %0 : vector<16x32xf32> to vector<16x32xbf16>
    %2 = vector.shape_cast %1 : vector<16x32xbf16> to vector<1x16x32xbf16>
    %3 = vector.shape_cast %2 : vector<1x16x32xbf16> to vector<1x16x32xbf16>
    %4 = vector.broadcast %3 : vector<1x16x32xbf16> to vector<4x16x32xbf16>
    %c0_1 = arith.constant 0 : index
    %c0_2 = arith.constant 0 : index
    %c0_3 = arith.constant 0 : index
    %5 = vector.load %arg1[%c0_1, %c0_2, %c0_3] : memref<4x32x8xbf16, #tpu.memory_space<vmem>>, vector<4x32x8xbf16>
    "tpu.trace_start"() <{level = 10 : i32, message = "hnc,hcd->hnd"}> : () -> ()
    %cst = arith.constant dense<0.000000e+00> : vector<4x16x8xf32>
    %6 = tpu.matmul %4, %5, %cst {dimension_numbers = #tpu.dot_dimension_numbers<[2], [1], [1], [2], [0, 0, 0, 1, 1, 2], [0], [0]>} : vector<4x16x32xbf16>, vector<4x32x8xbf16>, vector<4x16x8xf32> -> vector<4x16x8xf32>
    "tpu.trace_stop"() : () -> ()
    %c0_4 = arith.constant 0 : index
    %c0_5 = arith.constant 0 : index
    %c0_6 = arith.constant 0 : index
    %7 = vector.load %arg2[%c0_4, %c0_5, %c0_6] : memref<4x32x8xbf16, #tpu.memory_space<vmem>>, vector<4x32x8xbf16>
    "tpu.trace_start"() <{level = 10 : i32, message = "hnc,hcd->hnd"}> : () -> ()
    %cst_7 = arith.constant dense<0.000000e+00> : vector<4x16x8xf32>
    %8 = tpu.matmul %4, %7, %cst_7 {dimension_numbers = #tpu.dot_dimension_numbers<[2], [1], [1], [2], [0, 0, 0, 1, 1, 2], [0], [0]>} : vector<4x16x32xbf16>, vector<4x32x8xbf16>, vector<4x16x8xf32> -> vector<4x16x8xf32>
    "tpu.trace_stop"() : () -> ()
    %c0_8 = arith.constant 0 : index
    %c0_9 = arith.constant 0 : index
    %c0_10 = arith.constant 0 : index
    %9 = vector.load %arg3[%c0_8, %c0_9, %c0_10] : memref<4x32x8xbf16, #tpu.memory_space<vmem>>, vector<4x32x8xbf16>
    "tpu.trace_start"() <{level = 10 : i32, message = "hnc,hcd->hnd"}> : () -> ()
    %cst_11 = arith.constant dense<0.000000e+00> : vector<4x16x8xf32>
    %10 = tpu.matmul %4, %9, %cst_11 {dimension_numbers = #tpu.dot_dimension_numbers<[2], [1], [1], [2], [0, 0, 0, 1, 1, 2], [0], [0]>} : vector<4x16x32xbf16>, vector<4x32x8xbf16>, vector<4x16x8xf32> -> vector<4x16x8xf32>
    "tpu.trace_stop"() : () -> ()
    %c0_12 = arith.constant 0 : index
    %c0_13 = arith.constant 0 : index
    %11 = vector.load %arg5[%c0_12, %c0_13] : memref<1x32xf32, #tpu.memory_space<vmem>>, vector<1x32xf32>
    %12 = vector.extract_strided_slice %6 {offsets = [0, 0, 0], sizes = [4, 8, 8], strides = [1, 1, 1]} : vector<4x16x8xf32> to vector<4x8x8xf32>
    %13 = arith.truncf %12 : vector<4x8x8xf32> to vector<4x8x8xbf16>
    %14 = vector.extract_strided_slice %8 {offsets = [0, 0, 0], sizes = [4, 8, 8], strides = [1, 1, 1]} : vector<4x16x8xf32> to vector<4x8x8xf32>
    %15 = arith.truncf %14 : vector<4x8x8xf32> to vector<4x8x8xbf16>
    %16 = vector.extract_strided_slice %10 {offsets = [0, 0, 0], sizes = [4, 8, 8], strides = [1, 1, 1]} : vector<4x16x8xf32> to vector<4x8x8xf32>
    %17 = arith.truncf %16 : vector<4x8x8xf32> to vector<4x8x8xbf16>
    "tpu.trace_start"() <{level = 10 : i32, message = "hnd,hmd->hnm"}> : () -> ()
    %cst_14 = arith.constant dense<0.000000e+00> : vector<4x8x8xf32>
    %18 = tpu.matmul %13, %15, %cst_14 {dimension_numbers = #tpu.dot_dimension_numbers<[2], [2], [1], [1], [0, 0, 0, 1, 1, 1], [0], [0]>} : vector<4x8x8xbf16>, vector<4x8x8xbf16>, vector<4x8x8xf32> -> vector<4x8x8xf32>
    "tpu.trace_stop"() : () -> ()
    %cst_15 = arith.constant 0.353553385 : f32
    %19 = vector.broadcast %cst_15 : f32 to vector<4x8x8xf32>
    %20 = arith.mulf %18, %19 : vector<4x8x8xf32>
    %cst_16 = arith.constant dense<0xFF800000> : vector<4x8xf32>
    %21 = vector.multi_reduction <maximumf>, %20, %cst_16 [2] : vector<4x8x8xf32> to vector<4x8xf32>
    %22 = vector.shape_cast %21 : vector<4x8xf32> to vector<4x8x1xf32>
    %23 = vector.broadcast %22 : vector<4x8x1xf32> to vector<4x8x8xf32>
    %24 = arith.subf %20, %23 : vector<4x8x8xf32>
    %25 = math.exp %24 : vector<4x8x8xf32>
    %cst_17 = arith.constant dense<0.000000e+00> : vector<4x8xf32>
    %26 = vector.multi_reduction <add>, %25, %cst_17 [2] : vector<4x8x8xf32> to vector<4x8xf32>
    %27 = vector.shape_cast %26 : vector<4x8xf32> to vector<4x8x1xf32>
    %28 = tpu.reciprocal %27 {approx = true} : vector<4x8x1xf32> -> vector<4x8x1xf32>
    %29 = vector.broadcast %28 : vector<4x8x1xf32> to vector<4x8x8xf32>
    %30 = arith.mulf %25, %29 : vector<4x8x8xf32>
    %31 = arith.truncf %30 : vector<4x8x8xf32> to vector<4x8x8xbf16>
    "tpu.trace_start"() <{level = 10 : i32, message = "hnm,hmd->hnd"}> : () -> ()
    %cst_18 = arith.constant dense<0.000000e+00> : vector<4x8x8xf32>
    %32 = tpu.matmul %31, %17, %cst_18 {dimension_numbers = #tpu.dot_dimension_numbers<[2], [1], [1], [2], [0, 0, 0, 1, 1, 2], [0], [0]>} : vector<4x8x8xbf16>, vector<4x8x8xbf16>, vector<4x8x8xf32> -> vector<4x8x8xf32>
    "tpu.trace_stop"() : () -> ()
    %33 = arith.truncf %32 : vector<4x8x8xf32> to vector<4x8x8xbf16>
    %c0_19 = arith.constant 0 : index
    %c0_20 = arith.constant 0 : index
    %c0_21 = arith.constant 0 : index
    %34 = vector.load %arg4[%c0_19, %c0_20, %c0_21] : memref<4x8x32xbf16, #tpu.memory_space<vmem>>, vector<4x8x32xbf16>
    "tpu.trace_start"() <{level = 10 : i32, message = "hnd,hdc->hnc"}> : () -> ()
    %cst_22 = arith.constant dense<0.000000e+00> : vector<4x8x32xf32>
    %35 = tpu.matmul %33, %34, %cst_22 {dimension_numbers = #tpu.dot_dimension_numbers<[2], [1], [1], [2], [0, 0, 0, 1, 1, 2], [0], [0]>} : vector<4x8x8xbf16>, vector<4x8x32xbf16>, vector<4x8x32xf32> -> vector<4x8x32xf32>
    "tpu.trace_stop"() : () -> ()
    %cst_23 = arith.constant dense<0.000000e+00> : vector<8x32xf32>
    %36 = vector.multi_reduction <add>, %35, %cst_23 [0] : vector<4x8x32xf32> to vector<8x32xf32>
    %37 = vector.broadcast %11 : vector<1x32xf32> to vector<8x32xf32>
    %38 = arith.addf %36, %37 : vector<8x32xf32>
    %c0_24 = arith.constant 0 : index
    %c0_25 = arith.constant 0 : index
    %39 = vector.load %arg6[%c0_24, %c0_25] : memref<16x32xf32, #tpu.memory_space<vmem>>, vector<8x32xf32>
    tpu.vector_store %arg6[%c0_24, %c0_25], %38 {strides = array<i32>} : memref<16x32xf32, #tpu.memory_space<vmem>>, vector<8x32xf32>,
    %40 = vector.extract_strided_slice %6 {offsets = [0, 8, 0], sizes = [4, 8, 8], strides = [1, 1, 1]} : vector<4x16x8xf32> to vector<4x8x8xf32>
    %41 = arith.truncf %40 : vector<4x8x8xf32> to vector<4x8x8xbf16>
    %42 = vector.extract_strided_slice %8 {offsets = [0, 8, 0], sizes = [4, 8, 8], strides = [1, 1, 1]} : vector<4x16x8xf32> to vector<4x8x8xf32>
    %43 = arith.truncf %42 : vector<4x8x8xf32> to vector<4x8x8xbf16>
    %44 = vector.extract_strided_slice %10 {offsets = [0, 8, 0], sizes = [4, 8, 8], strides = [1, 1, 1]} : vector<4x16x8xf32> to vector<4x8x8xf32>
    %45 = arith.truncf %44 : vector<4x8x8xf32> to vector<4x8x8xbf16>
    "tpu.trace_start"() <{level = 10 : i32, message = "hnd,hmd->hnm"}> : () -> ()
    %cst_26 = arith.constant dense<0.000000e+00> : vector<4x8x8xf32>
    %46 = tpu.matmul %41, %43, %cst_26 {dimension_numbers = #tpu.dot_dimension_numbers<[2], [2], [1], [1], [0, 0, 0, 1, 1, 1], [0], [0]>} : vector<4x8x8xbf16>, vector<4x8x8xbf16>, vector<4x8x8xf32> -> vector<4x8x8xf32>
    "tpu.trace_stop"() : () -> ()
    %cst_27 = arith.constant 0.353553385 : f32
    %47 = vector.broadcast %cst_27 : f32 to vector<4x8x8xf32>
    %48 = arith.mulf %46, %47 : vector<4x8x8xf32>
    %cst_28 = arith.constant dense<0xFF800000> : vector<4x8xf32>
    %49 = vector.multi_reduction <maximumf>, %48, %cst_28 [2] : vector<4x8x8xf32> to vector<4x8xf32>
    %50 = vector.shape_cast %49 : vector<4x8xf32> to vector<4x8x1xf32>
    %51 = vector.broadcast %50 : vector<4x8x1xf32> to vector<4x8x8xf32>
    %52 = arith.subf %48, %51 : vector<4x8x8xf32>
    %53 = math.exp %52 : vector<4x8x8xf32>
    %cst_29 = arith.constant dense<0.000000e+00> : vector<4x8xf32>
    %54 = vector.multi_reduction <add>, %53, %cst_29 [2] : vector<4x8x8xf32> to vector<4x8xf32>
    %55 = vector.shape_cast %54 : vector<4x8xf32> to vector<4x8x1xf32>
    %56 = tpu.reciprocal %55 {approx = true} : vector<4x8x1xf32> -> vector<4x8x1xf32>
    %57 = vector.broadcast %56 : vector<4x8x1xf32> to vector<4x8x8xf32>
    %58 = arith.mulf %53, %57 : vector<4x8x8xf32>
    %59 = arith.truncf %58 : vector<4x8x8xf32> to vector<4x8x8xbf16>
    "tpu.trace_start"() <{level = 10 : i32, message = "hnm,hmd->hnd"}> : () -> ()
    %cst_30 = arith.constant dense<0.000000e+00> : vector<4x8x8xf32>
    %60 = tpu.matmul %59, %45, %cst_30 {dimension_numbers = #tpu.dot_dimension_numbers<[2], [1], [1], [2], [0, 0, 0, 1, 1, 2], [0], [0]>} : vector<4x8x8xbf16>, vector<4x8x8xbf16>, vector<4x8x8xf32> -> vector<4x8x8xf32>
    "tpu.trace_stop"() : () -> ()
    %61 = arith.truncf %60 : vector<4x8x8xf32> to vector<4x8x8xbf16>
    %c0_31 = arith.constant 0 : index
    %c0_32 = arith.constant 0 : index
    %c0_33 = arith.constant 0 : index
    %62 = vector.load %arg4[%c0_31, %c0_32, %c0_33] : memref<4x8x32xbf16, #tpu.memory_space<vmem>>, vector<4x8x32xbf16>
    "tpu.trace_start"() <{level = 10 : i32, message = "hnd,hdc->hnc"}> : () -> ()
    %cst_34 = arith.constant dense<0.000000e+00> : vector<4x8x32xf32>
    %63 = tpu.matmul %61, %62, %cst_34 {dimension_numbers = #tpu.dot_dimension_numbers<[2], [1], [1], [2], [0, 0, 0, 1, 1, 2], [0], [0]>} : vector<4x8x8xbf16>, vector<4x8x32xbf16>, vector<4x8x32xf32> -> vector<4x8x32xf32>
    "tpu.trace_stop"() : () -> ()
    %cst_35 = arith.constant dense<0.000000e+00> : vector<8x32xf32>
    %64 = vector.multi_reduction <add>, %63, %cst_35 [0] : vector<4x8x32xf32> to vector<8x32xf32>
    %65 = vector.broadcast %11 : vector<1x32xf32> to vector<8x32xf32>
    %66 = arith.addf %64, %65 : vector<8x32xf32>
    %c8 = arith.constant 8 : index
    %c0_36 = arith.constant 0 : index
    %67 = vector.load %arg6[%c8, %c0_36] : memref<16x32xf32, #tpu.memory_space<vmem>>, vector<8x32xf32>
    tpu.vector_store %arg6[%c8, %c0_36], %66 {strides = array<i32>} : memref<16x32xf32, #tpu.memory_space<vmem>>, vector<8x32xf32>,
    return
  }
}

</mosaic_0001>

<bundles_post_ra>
// kernel: tpu_custom_call.1
= control target key start
LH: loop header
LB: loop body
LE: loop exit
PB: predicated region body
PF: predicated region fallthrough
CT: control target
= control target key end

     0   :  { %v2477_v1 = vmov 0.0   ;;  %vm2478_vm0 = vmmov 0   ;;  %vm56_vm1 = vcmask 261120   ;;  %s2914_s0 = inlined_call_operand.vmem [shape: f32[16,32], index: 0, kind: input, shape index: {}]   ;;  %s2915_s1 = inlined_call_operand.vmem [shape: bf16[4,32,8], index: 1, kind: input, shape index: {}]   ;;  %s2916_s2 = inlined_call_operand.vmem [shape: bf16[4,32,8], index: 2, kind: input, shape index: {}]   ;;  %s2917_s3 = inlined_call_operand.vmem [shape: bf16[4,32,8], index: 3, kind: input, shape index: {}]   ;;  %s2918_s4 = inlined_call_operand.vmem [shape: bf16[4,8,32], index: 4, kind: input, shape index: {}]   ;;  %s2919_s5 = inlined_call_operand.vmem [shape: f32[1,32], index: 5, kind: input, shape index: {}]   ;;  %s2920_s6 = inlined_call_operand.hbm [shape: f32[16,32], index: 6, kind: output, shape index: {}]  }
   0x1   :  { %v2397_v0 = vld [vmem:[%s2915_s1] sm:$0xff]   ;;  %2152 = vmatprep.subr.bf16.mxu0 %v2477_v1  ;;  %2160 = vmatprep.subr.bf16.mxu1 %v2477_v1  ;;  %v2398_v2 = vld [vmem:[%s2915_s1 + $0x10] sm:$0xff]   ;;  %v2399_v3 = vld [vmem:[%s2915_s1 + $0x8] sm:$0xff]  }
   0x2   :  { %2153 = vmatpush3.bf16.msra.mxu0 %v2397_v0  ;;  %2156 = vmatprep.mubr.msk.bf16.mxu0 %vm2478_vm0, %v2477_v1  ;;  %v2400_v4 = vld [vmem:[%s2915_s1 + $0x18] sm:$0xff]   ;;  %v25_v5 = vld [vmem:[%s2914_s0] sm:$0xff]  ;;  %v26_v6 = vld [vmem:[%s2914_s0 + $0x8] sm:$0xff] }
   0x3   :  { %2161 = vmatpush3.bf16.msra.mxu1 %v2398_v2  ;;  %2154 = vmatprep.subr.bf16.mxu0 %v2477_v1  ;;  %v2543_v7 = vpack.c.bf16 %v26_v6, %v25_v5  ;;  %v2401_v8 = vld [vmem:[%s2915_s1 + $0x20] sm:$0xff]   ;;  %v2402_v9 = vld [vmem:[%s2915_s1 + $0x30] sm:$0xff]   ;;  %v2403_v10 = vld [vmem:[%s2915_s1 + $0x28] sm:$0xff]  }
   0x4   :  { %2162 = vmatprep.subr.bf16.mxu1 %v2477_v1  ;;  %2164 = vmatprep.mubr.msk.bf16.mxu1 %vm2478_vm0, %v2477_v1  ;;  %v2404_v11 = vld [vmem:[%s2915_s1 + $0x38] sm:$0xff]   ;;  %v2405_v12 = vld [vmem:[%s2916_s2] sm:$0xff]   ;;  %v2406_v13 = vld [vmem:[%s2916_s2 + $0x10] sm:$0xff]  }
   0x5   :  { %v2407_v14 = vld [vmem:[%s2916_s2 + $0x8] sm:$0xff]   ;;  %v2408_v15 = vld [vmem:[%s2916_s2 + $0x18] sm:$0xff]   ;;  %v2409_v16 = vld [vmem:[%s2916_s2 + $0x20] sm:$0xff]  }
   0x6   :  { %2155 = vmatpush3.bf16.msra.mxu0 %v2399_v3 }
   0x7   :  { %2163 = vmatpush3.bf16.msra.mxu1 %v2400_v4  ;;  %2168 = vmatprep.subr.bf16.mxu0 %v2477_v1 }
   0x8   :  { %2176 = vmatprep.subr.bf16.mxu1 %v2477_v1 }
   0x9   :  { %2157 = vmatmul.mubr.msk.bf16.vlgmr.msra.gmra.mrb[0].mxu0 %vm56_vm1, %v2543_v7 }
   0xa   :  { %2165 = vmatmul.mubr.msk.bf16.vlgmr.msra.gmra.mrb[0].mxu1 %vm56_vm1, %v2543_v7  ;;  %2169 = vmatpush3.bf16.msra.mxu0 %v2401_v8 }
   0xb   :  { %2177 = vmatpush3.bf16.msra.mxu1 %v2402_v9  ;;  %2170 = vmatprep.subr.bf16.mxu0 %v2477_v1 }
   0xc   :  { %2178 = vmatprep.subr.bf16.mxu1 %v2477_v1  ;;  %2172 = vmatprep.mubr.msk.bf16.mxu0 %vm2478_vm0, %v2477_v1 }
   0xd   :  { %2180 = vmatprep.mubr.msk.bf16.mxu1 %vm2478_vm0, %v2477_v1 }
   0xe   :  { %2171 = vmatpush3.bf16.msra.mxu0 %v2403_v10 }
   0xf   :  { %2179 = vmatpush3.bf16.msra.mxu1 %v2404_v11  ;;  %2184 = vmatprep.subr.bf16.mxu0 %v2477_v1 }
  0x10   :  { %2192 = vmatprep.subr.bf16.mxu1 %v2477_v1 }
  0x11   :  { %2173 = vmatmul.mubr.msk.bf16.vlgmr.msra.gmra.mrb[4].mxu0 %vm56_vm1, %v2543_v7 }
  0x12   :  { %2181 = vmatmul.mubr.msk.bf16.vlgmr.msra.gmra.mrb[4].mxu1 %vm56_vm1, %v2543_v7  ;;  %2185 = vmatpush3.bf16.msra.mxu0 %v2405_v12 }
  0x13   :  { %2193 = vmatpush3.bf16.msra.mxu1 %v2406_v13  ;;  %2186 = vmatprep.subr.bf16.mxu0 %v2477_v1 }
  0x14   :  { %2194 = vmatprep.subr.bf16.mxu1 %v2477_v1  ;;  %2188 = vmatprep.mubr.msk.bf16.mxu0 %vm2478_vm0, %v2477_v1 }
  0x15   :  { %2196 = vmatprep.mubr.msk.bf16.mxu1 %vm2478_vm0, %v2477_v1 }
  0x16   :  { %2187 = vmatpush3.bf16.msra.mxu0 %v2407_v14 }
  0x17   :  { %11 = vsyncpa [#allocation3], 0  ;;  %2195 = vmatpush3.bf16.msra.mxu1 %v2408_v15  ;;  %2200 = vmatprep.subr.bf16.mxu0 %v2477_v1  ;;  %v2410_v17 = vld [vmem:[%s2916_s2 + $0x30] sm:$0xff]   ;;  %v2411_v18 = vld [vmem:[%s2916_s2 + $0x28] sm:$0xff]   ;;  %vm729_vm2 = vcmask 64512   ;;  %vm969_vm3 = vcmask 1043456  }
  0x18   :  { %2208 = vmatprep.subr.bf16.mxu1 %v2477_v1  ;;  %v2412_v19 = vld [vmem:[%s2916_s2 + $0x38] sm:$0xff]   ;;  %v2413_v20 = vld [vmem:[%s2917_s3] sm:$0xff]   ;;  %v2414_v21 = vld [vmem:[%s2917_s3 + $0x10] sm:$0xff]  }
  0x19   :  { %2189 = vmatmul.mubr.msk.bf16.vlgmr.msra.gmra.mrb[8].mxu0 %vm56_vm1, %v2543_v7  ;;  %v2415_v22 = vld [vmem:[%s2917_s3 + $0x8] sm:$0xff]   ;;  %v2416_v23 = vld [vmem:[%s2917_s3 + $0x18] sm:$0xff]   ;;  %v2417_v24 = vld [vmem:[%s2917_s3 + $0x20] sm:$0xff]  }
  0x1a   :  { %2197 = vmatmul.mubr.msk.bf16.vlgmr.msra.gmra.mrb[8].mxu1 %vm56_vm1, %v2543_v7  ;;  %2201 = vmatpush3.bf16.msra.mxu0 %v2409_v16  ;;  %v2418_v25 = vld [vmem:[%s2917_s3 + $0x30] sm:$0xff]   ;;  %v2419_v26 = vld [vmem:[%s2917_s3 + $0x28] sm:$0xff]   ;;  %v2420_v27 = vld [vmem:[%s2917_s3 + $0x38] sm:$0xff]  }
  0x1b   :  { %2209 = vmatpush3.bf16.msra.mxu1 %v2410_v17  ;;  %2202 = vmatprep.subr.bf16.mxu0 %v2477_v1 }
  0x1c   :  { %2210 = vmatprep.subr.bf16.mxu1 %v2477_v1  ;;  %2204 = vmatprep.mubr.msk.bf16.mxu0 %vm2478_vm0, %v2477_v1 }
  0x1d   :  { %2212 = vmatprep.mubr.msk.bf16.mxu1 %vm2478_vm0, %v2477_v1 }
  0x1e   :  { %2203 = vmatpush3.bf16.msra.mxu0 %v2411_v18 }
  0x1f   :  { %2211 = vmatpush3.bf16.msra.mxu1 %v2412_v19  ;;  %2216 = vmatprep.subr.bf16.mxu0 %v2477_v1 }
  0x20   :  { %2224 = vmatprep.subr.bf16.mxu1 %v2477_v1 }
  0x21   :  { %2205 = vmatmul.mubr.msk.bf16.vlgmr.msra.gmra.mrb[12].mxu0 %vm56_vm1, %v2543_v7 }
  0x22   :  { %2213 = vmatmul.mubr.msk.bf16.vlgmr.msra.gmra.mrb[12].mxu1 %vm56_vm1, %v2543_v7  ;;  %2217 = vmatpush3.bf16.msra.mxu0 %v2413_v20 }
  0x23   :  { %2225 = vmatpush3.bf16.msra.mxu1 %v2414_v21  ;;  %2218 = vmatprep.subr.bf16.mxu0 %v2477_v1 }
  0x24   :  { %2226 = vmatprep.subr.bf16.mxu1 %v2477_v1  ;;  %2220 = vmatprep.mubr.msk.bf16.mxu0 %vm2478_vm0, %v2477_v1 }
  0x25   :  { %2228 = vmatprep.mubr.msk.bf16.mxu1 %vm2478_vm0, %v2477_v1 }
  0x26   :  { %2219 = vmatpush3.bf16.msra.mxu0 %v2415_v22 }
  0x27   :  { %2232 = vmatprep.subr.bf16.mxu0 %v2477_v1  ;;  %2227 = vmatpush3.bf16.msra.mxu1 %v2416_v23 }
  0x28   :  { %2240 = vmatprep.subr.bf16.mxu1 %v2477_v1 }
  0x29   :  { %2221 = vmatmul.mubr.msk.bf16.vlgmr.msra.gmra.mrb[16].mxu0 %vm56_vm1, %v2543_v7 }
  0x2a   :  { %2233 = vmatpush3.bf16.msra.mxu0 %v2417_v24  ;;  %2236 = vmatprep.mubr.msk.bf16.mxu0 %vm2478_vm0, %v2477_v1 }
  0x2b   :  { %2229 = vmatmul.mubr.msk.bf16.vlgmr.msra.gmra.mrb[16].mxu1 %vm56_vm1, %v2543_v7  ;;  %2234 = vmatprep.subr.bf16.mxu0 %v2477_v1 }
  0x2c   :  { %2241 = vmatpush3.bf16.msra.mxu1 %v2418_v25  ;;  %2244 = vmatprep.mubr.msk.bf16.mxu1 %vm2478_vm0, %v2477_v1 }
  0x2d   :  { %2242 = vmatprep.subr.bf16.mxu1 %v2477_v1 }
  0x2e   :  { %2235 = vmatpush3.bf16.msra.mxu0 %v2419_v26 }
  0x2f   :  { %2248 = vmatprep.subr.bf16.mxu0 %v2477_v1 }
  0x30   :  { %2243 = vmatpush3.bf16.msra.mxu1 %v2420_v27 }
  0x31   :  { %2254 = vmatprep.subr.bf16.mxu1 %v2477_v1  ;;  %2237 = vmatmul.mubr.msk.bf16.vlgmr.msra.gmra.mrb[20].mxu0 %vm56_vm1, %v2543_v7 }
  0x32   :  { %2250 = vmatprep.mubr.msk.bf16.mxu0 %vm2478_vm0, %v2477_v1 }
  0x33   :  { %2245 = vmatmul.mubr.msk.bf16.vlgmr.msra.gmra.mrb[20].mxu1 %vm56_vm1, %v2543_v7 }
  0x34   :  { %2256 = vmatprep.mubr.msk.bf16.mxu1 %vm2478_vm0, %v2477_v1 }
  0xdc   :  { %v94_v28 = vpop.f32.mrb[0].mxu0 }
  0xdd   :  { %v2158_v29 = vpop.f32.mrb[1].mxu0  ;;  %v147_v30 = vpop.f32.mrb[0].mxu1  ;;  %v717_v57 = vpack.c.bf16 %v94_v28, %v94_v28 }
  0xde   :  { %v2675_v31 = vpop.f32.mrb[2].mxu0  ;;  %v2166_v32 = vpop.f32.mrb[1].mxu1  ;;  %v718_v61 = vpack.c.bf16 %v147_v30, %v147_v30 }
  0xdf   :  { %v2159_v33 = vpop.f32.mrb[3].mxu0  ;;  %v2677_v34 = vpop.f32.mrb[2].mxu1 }
  0xe0   :  { %v2167_v35 = vpop.f32.mrb[3].mxu1 }
  0xe4   :  { %v200_v36 = vpop.f32.mrb[4].mxu0 }
  0xe5   :  { %v2174_v37 = vpop.f32.mrb[5].mxu0  ;;  %v253_v38 = vpop.f32.mrb[4].mxu1  ;;  %v719_v7 = vpack.c.bf16 %v200_v36, %v200_v36 }
  0xe6   :  { %v2679_v39 = vpop.f32.mrb[6].mxu0  ;;  %v2182_v40 = vpop.f32.mrb[5].mxu1  ;;  %v720_v8 = vpack.c.bf16 %v253_v38, %v253_v38 }
  0xe7   :  { %v2175_v41 = vpop.f32.mrb[7].mxu0  ;;  %v2681_v42 = vpop.f32.mrb[6].mxu1 }
  0xe8   :  { %v2183_v43 = vpop.f32.mrb[7].mxu1 }
  0xec   :  { %v322_v44 = vpop.f32.mrb[8].mxu0 }
  0xed   :  { %v721_v45 = vpack.c.bf16 %v322_v44, %v322_v44  ;;  %v375_v46 = vpop.f32.mrb[8].mxu1  ;;  %v2190_v47 = vpop.f32.mrb[9].mxu0 }
  0xee   :  { %v722_v48 = vpack.c.bf16 %v375_v46, %v375_v46  ;;  %v2683_v49 = vpop.f32.mrb[10].mxu0  ;;  %v2198_v50 = vpop.f32.mrb[9].mxu1 }
  0xef   :  { %v734_v51 = vsel %vm729_vm2, %v721_v45, 0  ;;  %v2191_v52 = vpop.f32.mrb[11].mxu0  ;;  %v2686_v53 = vpop.f32.mrb[10].mxu1 }
  0xf0   :  { %v780_v54 = vsel %vm729_vm2, %v722_v48, 0  ;;  %v2199_v55 = vpop.f32.mrb[11].mxu1  ;;  %2249 = vmatpush3.bf16.xpose.msra.mxu0 %v734_v51 }
  0xf1   :  { %2255 = vmatpush3.bf16.xpose.msra.mxu1 %v780_v54  ;;  %2260 = vmatprep.subr.bf16.mxu0 %v2477_v1 }
  0xf2   :  { %2266 = vmatprep.subr.bf16.mxu1 %v2477_v1 }
  0xf4   :  { %v428_v56 = vpop.f32.mrb[12].mxu0 }
  0xf5   :  { %v723_v58 = vpack.c.bf16 %v428_v56, %v428_v56  ;;  %v481_v59 = vpop.f32.mrb[12].mxu1  ;;  %v2206_v60 = vpop.f32.mrb[13].mxu0 }
  0xf6   :  { %v724_v62 = vpack.c.bf16 %v481_v59, %v481_v59  ;;  %v2691_v63 = vpop.f32.mrb[14].mxu0  ;;  %v2214_v0 = vpop.f32.mrb[13].mxu1 }
  0xf7   :  { %v826_v2 = vsel %vm729_vm2, %v723_v58, 0  ;;  %v2207_v3 = vpop.f32.mrb[15].mxu0  ;;  %v2694_v4 = vpop.f32.mrb[14].mxu1  ;;  %2251 = vmatmul.mubr.msk.bf16.vlgmr.msra.gmra.mrb[24].mxu0 %vm729_vm2, %v717_v57 }
  0xf8   :  { %v872_v5 = vsel %vm729_vm2, %v724_v62, 0  ;;  %2257 = vmatmul.mubr.msk.bf16.vlgmr.msra.gmra.mrb[24].mxu1 %vm729_vm2, %v718_v61  ;;  %v2215_v6 = vpop.f32.mrb[15].mxu1  ;;  %2261 = vmatpush3.bf16.xpose.msra.mxu0 %v826_v2 }
  0xf9   :  { %2267 = vmatpush3.bf16.xpose.msra.mxu1 %v872_v5  ;;  %2262 = vmatprep.mubr.msk.bf16.mxu0 %vm2478_vm0, %v2477_v1 }
  0xfa   :  { %2268 = vmatprep.mubr.msk.bf16.mxu1 %vm2478_vm0, %v2477_v1  ;;  %2272 = vmatprep.subr.bf16.mxu0 %v2477_v1 }
  0xfb   :  { %2278 = vmatprep.subr.bf16.mxu1 %v2477_v1 }
  0xfc   :  { %v550_v9 = vpop.f32.mrb[16].mxu0 }
  0xfd   :  { %v725_v10 = vpack.c.bf16 %v550_v9, %v550_v9  ;;  %v2222_v11 = vpop.f32.mrb[17].mxu0 }
  0xfe   :  { %v2711_v12 = vpop.f32.mrb[18].mxu0  ;;  %v603_v13 = vpop.f32.mrb[16].mxu1 }
  0xff   :  { %2263 = vmatmul.mubr.msk.bf16.vlgmr.msra.gmra.mrb[28].mxu0 %vm729_vm2, %v719_v7  ;;  %v971_v14 = vsel %vm969_vm3, %v725_v10, 0  ;;  %v2223_v15 = vpop.f32.mrb[19].mxu0  ;;  %v726_v16 = vpack.c.bf16 %v603_v13, %v603_v13  ;;  %v2230_v17 = vpop.f32.mrb[17].mxu1 }
 0x100   :  { %2269 = vmatmul.mubr.msk.bf16.vlgmr.msra.gmra.mrb[28].mxu1 %vm729_vm2, %v720_v8  ;;  %2274 = vmatprep.mubr.msk.bf16.mxu0 %vm2478_vm0, %v2477_v1  ;;  %v2714_v18 = vpop.f32.mrb[18].mxu1 }
 0x101   :  { %2280 = vmatprep.mubr.msk.bf16.mxu1 %vm2478_vm0, %v2477_v1  ;;  %2273 = vmatpush3.bf16.msra.mxu0 %v971_v14  ;;  %v1017_v19 = vsel %vm969_vm3, %v726_v16, 0  ;;  %v2231_v20 = vpop.f32.mrb[19].mxu1 }
 0x102   :  { %2284 = vmatprep.subr.bf16.mxu0 %v2477_v1  ;;  %2279 = vmatpush3.bf16.msra.mxu1 %v1017_v19 }
 0x103   :  { %2290 = vmatprep.subr.bf16.mxu1 %v2477_v1 }
 0x104   :  { %v2719_v21 = vpop.f32.mrb[20].mxu0 }
 0x105   :  { %v2238_v23 = vpop.f32.mrb[21].mxu0 }
 0x106   :  { %v2721_v22 = vpop.f32.mrb[20].mxu1  ;;  %v2723_v25 = vpop.f32.mrb[22].mxu0 }
 0x107   :  { %v2246_v24 = vpop.f32.mrb[21].mxu1  ;;  %v2239_v27 = vpop.f32.mrb[23].mxu0 }
 0x108   :  { %v2725_v26 = vpop.f32.mrb[22].mxu1 }
 0x109   :  { %v2247_v28 = vpop.f32.mrb[23].mxu1 }
 0x10a   :  { %v727_v28 = vpack.c.bf16 %v2719_v21, %v2719_v21 }
 0x1ca   :  { %v770_v29 = vpop.f32.mrb[24].mxu0 }
 0x1cb   :  { %v914_v30 = vmul.f32 0.35355338, %v770_v29  ;;  %v816_v32 = vpop.f32.mrb[24].mxu1  ;;  %v2252_v33 = vpop.f32.mrb[25].mxu0 }
 0x1cc   :  { %v2258_v35 = vpop.f32.mrb[25].mxu1  ;;  %v773_v36 = vpop.f32.mrb[26].mxu0  ;;  %v915_v37 = vmul.f32 0.35355338, %v816_v32 }
 0x1cd   :  { %v819_v38 = vpop.f32.mrb[26].mxu1  ;;  %v2253_v40 = vpop.f32.mrb[27].mxu0  ;;  %v918_v41 = vsel %vm729_vm2, %v914_v30, -inf  ;;  %v1063_v35 = vsel %vm969_vm3, %v727_v28, 0  ;;  %v728_v36 = vpack.c.bf16 %v2721_v22, %v2721_v22  ;;  %v1367_v28 = vpack.c.bf16 %v2714_v18, %v2714_v18 }
 0x1ce   :  { %v2259_v43 = vpop.f32.mrb[27].mxu1  ;;  %919 = vmax.xlane.f32.xlu0 %v918_v41  ;;  %v921_v44 = vsel %vm729_vm2, %v915_v37, -inf  ;;  %v1155_v40 = vld [vmem:[%s2918_s4] sm:$0xf] }
 0x1cf   :  { %v1109_v41 = vsel %vm969_vm3, %v728_v36, 0 }
 0x1d2   :  { %922 = vmax.xlane.f32.xlu0 %v921_v44  ;;  %v862_v45 = vpop.f32.mrb[28].mxu0  ;;  %v1163_v44 = vsel %vm969_vm3, %v1155_v40, 0 }
 0x1d3   :  { %v908_v46 = vpop.f32.mrb[28].mxu1  ;;  %v916_v47 = vmul.f32 0.35355338, %v862_v45  ;;  %v2264_v48 = vpop.f32.mrb[29].mxu0 }
 0x1d4   :  { %v2270_v50 = vpop.f32.mrb[29].mxu1  ;;  %v865_v51 = vpop.f32.mrb[30].mxu0  ;;  %v917_v52 = vmul.f32 0.35355338, %v908_v46  ;;  %v1156_v48 = vld [vmem:[%s2918_s4 + $0x4] sm:$0xf] }
 0x1d5   :  { %v911_v54 = vpop.f32.mrb[30].mxu1  ;;  %v2265_v55 = vpop.f32.mrb[31].mxu0  ;;  %v924_v56 = vsel %vm729_vm2, %v916_v47, -inf  ;;  %v1209_v50 = vsel %vm969_vm3, %v1156_v48, 0  ;;  %v1157_v51 = vld [vmem:[%s2918_s4 + $0x8] sm:$0xf] }
 0x1d6   :  { %v2271_v57 = vpop.f32.mrb[31].mxu1  ;;  %925 = vmax.xlane.f32.xlu1 %v924_v56  ;;  %v927_v58 = vsel %vm729_vm2, %v917_v52, -inf  ;;  %v1255_v56 = vsel %vm969_vm3, %v1157_v51, 0 }
 0x1da   :  { %928 = vmax.xlane.f32.xlu1 %v927_v58  ;;  %v1158_v58 = vld [vmem:[%s2918_s4 + $0xc] sm:$0xf] }
 0x25b   :  { %v920_v59 = vpop.xlane.xlu0 %919 }
 0x25c   :  { %v930_v60 = vsub.f32 %v914_v30, %v920_v59 }
 0x25e   :  { %v934_v61 = vmul.f32 1.442695, %v930_v60 }
 0x25f   :  { %v923_v62 = vpop.xlane.xlu0 %922 }
 0x260   :  { %2421 = vpow2.f32 %v934_v61  ;;  %v931_v0 = vsub.f32 %v915_v37, %v923_v62 }
 0x262   :  { %v936_v2 = vmul.f32 1.442695, %v931_v0  ;;  %v1301_v0 = vsel %vm969_vm3, %v1158_v58, 0 }
 0x263   :  { %v926_v3 = vpop.xlane.xlu1 %925 }
 0x264   :  { %2423 = vpow2.f32 %v936_v2  ;;  %v932_v5 = vsub.f32 %v916_v47, %v926_v3 }
 0x266   :  { %v938_v6 = vmul.f32 1.442695, %v932_v5  ;;  %v1362_v5 = vpack.c.bf16 %v2683_v49, %v2683_v49 }
 0x267   :  { %v929_v7 = vpop.xlane.xlu1 %928 }
 0x268   :  { %2425 = vpow2.f32 %v938_v6  ;;  %v933_v8 = vsub.f32 %v917_v52, %v929_v7 }
 0x26a   :  { %v2422_v9 = vpop.eup %2421  ;;  %v940_v10 = vmul.f32 1.442695, %v933_v8 }
 0x26b   :  { %v942_v11 = vsel %vm729_vm2, %v2422_v9, 0.0 }
 0x26c   :  { %2427 = vpow2.f32 %v940_v10  ;;  %943 = vadd.xlane.f32.xlu0 %v942_v11  ;;  %v1374_v11 = vsel %vm729_vm2, %v1362_v5, 0 }
 0x26e   :  { %v2424_v13 = vpop.eup %2423 }
 0x26f   :  { %v945_v14 = vsel %vm729_vm2, %v2424_v13, 0.0 }
 0x270   :  { %946 = vadd.xlane.f32.xlu1 %v945_v14 }
 0x272   :  { %v2426_v15 = vpop.eup %2425 }
 0x273   :  { %v948_v16 = vsel %vm729_vm2, %v2426_v15, 0.0 }
 0x274   :  { %949 = vadd.xlane.f32.xlu0 %v948_v16 }
 0x276   :  { %v2428_v17 = vpop.eup %2427 }
 0x277   :  { %v951_v19 = vsel %vm729_vm2, %v2428_v17, 0.0 }
 0x278   :  { %952 = vadd.xlane.f32.xlu1 %v951_v19 }
 0x2f9   :  { %v944_v20 = vpop.xlane.xlu0 %943 }
 0x2fa   :  { %2429 = vrcp.f32 %v944_v20  ;;  %v1364_v20 = vpack.c.bf16 %v2691_v63, %v2691_v63  ;;  %v1359_v63 = vpack.c.bf16 %v2677_v34, %v2677_v34 }
 0x2fd   :  { %v947_v23 = vpop.xlane.xlu1 %946 }
 0x2fe   :  { %2431 = vrcp.f32 %v947_v23  ;;  %v1466_v23 = vsel %vm729_vm2, %v1364_v20, 0 }
 0x301   :  { %v950_v24 = vpop.xlane.xlu0 %949 }
 0x302   :  { %2433 = vrcp.f32 %v950_v24  ;;  %v1365_v24 = vpack.c.bf16 %v2694_v4, %v2694_v4  ;;  %v1360_v4 = vpack.c.bf16 %v2679_v39, %v2679_v39  ;;  %v1656_v39 = vsel %vm969_vm3, %v1367_v28, 0 }
 0x304   :  { %v2430_v27 = vpop.eup %2429 }
 0x305   :  { %v958_v29 = vmul.f32 %v2430_v27, %v2422_v9  ;;  %v953_v30 = vpop.xlane.xlu1 %952  ;;  %v1366_v27 = vpack.c.bf16 %v2711_v12, %v2711_v12  ;;  %v1361_v12 = vpack.c.bf16 %v2681_v42, %v2681_v42 }
 0x306   :  { %2435 = vrcp.f32 %v953_v30 }
 0x307   :  { %v962_v32 = vpack.c.bf16 %v958_v29, %v958_v29  ;;  %v1610_v34 = vsel %vm969_vm3, %v1366_v27, 0 }
 0x308   :  { %v2432_v33 = vpop.eup %2431 }
 0x309   :  { %v959_v37 = vmul.f32 %v2432_v33, %v2424_v13  ;;  %2275 = vmatmul.mubr.msk.bf16.vlgmr.msra.gmra.mrb[32].mxu0 %vm729_vm2, %v962_v32  ;;  %v1363_v13 = vpack.c.bf16 %v2686_v53, %v2686_v53  ;;  %v1358_v53 = vpack.c.bf16 %v2675_v31, %v2675_v31  ;;  %v1512_v31 = vsel %vm729_vm2, %v1365_v24, 0 }
 0x30a   :  { %2285 = vmatpush3.bf16.msra.mxu0 %v1063_v35  ;;  %2286 = vmatprep.mubr.msk.bf16.mxu0 %vm2478_vm0, %v2477_v1 }
 0x30b   :  { %v963_v38 = vpack.c.bf16 %v959_v37, %v959_v37  ;;  %2296 = vmatprep.subr.bf16.mxu0 %v2477_v1  ;;  %v1420_v19 = vsel %vm729_vm2, %v1363_v13, 0 }
 0x30c   :  { %v2434_v21 = vpop.eup %2433 }
 0x30d   :  { %v960_v43 = vmul.f32 %v2434_v21, %v2426_v15  ;;  %2281 = vmatmul.mubr.msk.bf16.vlgmr.msra.gmra.mrb[32].mxu1 %vm729_vm2, %v963_v38 }
 0x30e   :  { %2291 = vmatpush3.bf16.msra.mxu1 %v1109_v41  ;;  %2292 = vmatprep.mubr.msk.bf16.mxu1 %vm2478_vm0, %v2477_v1 }
 0x30f   :  { %v964_v22 = vpack.c.bf16 %v960_v43, %v960_v43  ;;  %2302 = vmatprep.subr.bf16.mxu1 %v2477_v1 }
 0x310   :  { %v2436_v45 = vpop.eup %2435 }
 0x311   :  { %v961_v46 = vmul.f32 %v2436_v45, %v2428_v17  ;;  %2287 = vmatmul.mubr.msk.bf16.vlgmr.msra.gmra.mrb[36].mxu0 %vm729_vm2, %v964_v22 }
 0x312   :  { %2297 = vmatpush3.bf16.msra.mxu0 %v1163_v44  ;;  %2298 = vmatprep.mubr.msk.bf16.mxu0 %vm2478_vm0, %v2477_v1 }
 0x313   :  { %v965_v47 = vpack.c.bf16 %v961_v46, %v961_v46  ;;  %2308 = vmatprep.subr.bf16.mxu0 %v2477_v1 }
 0x315   :  { %2293 = vmatmul.mubr.msk.bf16.vlgmr.msra.gmra.mrb[36].mxu1 %vm729_vm2, %v965_v47  ;;  %v2837_v47 = vld [vmem:[%s2919_s5] ss:$0 sm:$0xff] }
 0x316   :  { %2304 = vmatprep.mubr.msk.bf16.mxu1 %vm2478_vm0, %v2477_v1  ;;  %2303 = vmatpush3.bf16.msra.mxu1 %v1209_v50 }
 0x317   :  { %2314 = vmatprep.subr.bf16.mxu1 %v2477_v1 }
 0x3dc   :  { %v1007_v52 = vpop.f32.mrb[32].mxu0 }
 0x3dd   :  { %v1151_v54 = vpack.c.bf16 %v1007_v52, %v1007_v52  ;;  %v2276_v55 = vpop.f32.mrb[33].mxu0 }
 0x3de   :  { %v1010_v57 = vpop.f32.mrb[34].mxu0 }
 0x3df   :  { %v2277_v59 = vpop.f32.mrb[35].mxu0  ;;  %2299 = vmatmul.mubr.msk.bf16.vlgmr.msra.gmra.mrb[40].mxu0 %vm729_vm2, %v1151_v54 }
 0x3e0   :  { %2309 = vmatpush3.bf16.msra.mxu0 %v1255_v56  ;;  %v1053_v60 = vpop.f32.mrb[32].mxu1  ;;  %2310 = vmatprep.mubr.msk.bf16.mxu0 %vm2478_vm0, %v2477_v1 }
 0x3e1   :  { %v1152_v61 = vpack.c.bf16 %v1053_v60, %v1053_v60  ;;  %v2282_v62 = vpop.f32.mrb[33].mxu1  ;;  %2320 = vmatprep.subr.bf16.mxu0 %v2477_v1 }
 0x3e2   :  { %v1056_v2 = vpop.f32.mrb[34].mxu1 }
 0x3e3   :  { %v2283_v3 = vpop.f32.mrb[35].mxu1  ;;  %2305 = vmatmul.mubr.msk.bf16.vlgmr.msra.gmra.mrb[40].mxu1 %vm729_vm2, %v1152_v61 }
 0x3e4   :  { %2315 = vmatpush3.bf16.msra.mxu1 %v1301_v0  ;;  %v1099_v6 = vpop.f32.mrb[36].mxu0  ;;  %2316 = vmatprep.mubr.msk.bf16.mxu1 %vm2478_vm0, %v2477_v1 }
 0x3e5   :  { %v1153_v7 = vpack.c.bf16 %v1099_v6, %v1099_v6  ;;  %v2288_v8 = vpop.f32.mrb[37].mxu0  ;;  %2326 = vmatprep.subr.bf16.mxu1 %v2477_v1 }
 0x3e6   :  { %v1102_v9 = vpop.f32.mrb[38].mxu0 }
 0x3e7   :  { %v2289_v10 = vpop.f32.mrb[39].mxu0  ;;  %2311 = vmatmul.mubr.msk.bf16.vlgmr.msra.gmra.mrb[44].mxu0 %vm729_vm2, %v1153_v7 }
 0x3e8   :  { %v1145_v14 = vpop.f32.mrb[36].mxu1  ;;  %2322 = vmatprep.mubr.msk.bf16.mxu0 %vm2478_vm0, %v2477_v1 }
 0x3e9   :  { %v1154_v49 = vpack.c.bf16 %v1145_v14, %v1145_v14  ;;  %2321 = vmatpush3.bf16.xpose.msra.mxu0 %v1374_v11  ;;  %v2294_v15 = vpop.f32.mrb[37].mxu1 }
 0x3ea   :  { %v1148_v16 = vpop.f32.mrb[38].mxu1  ;;  %2332 = vmatprep.subr.bf16.mxu0 %v2477_v1 }
 0x3eb   :  { %v2295_v17 = vpop.f32.mrb[39].mxu1  ;;  %2317 = vmatmul.mubr.msk.bf16.vlgmr.msra.gmra.mrb[44].mxu1 %vm729_vm2, %v1154_v49 }
 0x3ec   :  { %2328 = vmatprep.mubr.msk.bf16.mxu1 %vm2478_vm0, %v2477_v1 }
 0x3ed   :  { %2327 = vmatpush3.bf16.xpose.msra.mxu1 %v1420_v19 }
 0x3ee   :  { %2338 = vmatprep.subr.bf16.mxu1 %v2477_v1 }
 0x3f0   :  { %2323 = vmatmul.mubr.msk.bf16.vlgmr.msra.gmra.mrb[48].mxu0 %vm729_vm2, %v1358_v53 }
 0x3f1   :  { %2333 = vmatpush3.bf16.xpose.msra.mxu0 %v1466_v23  ;;  %2334 = vmatprep.mubr.msk.bf16.mxu0 %vm2478_vm0, %v2477_v1 }
 0x3f2   :  { %2344 = vmatprep.subr.bf16.mxu0 %v2477_v1 }
 0x3f4   :  { %2329 = vmatmul.mubr.msk.bf16.vlgmr.msra.gmra.mrb[48].mxu1 %vm729_vm2, %v1359_v63 }
 0x3f5   :  { %2339 = vmatpush3.bf16.xpose.msra.mxu1 %v1512_v31  ;;  %2340 = vmatprep.mubr.msk.bf16.mxu1 %vm2478_vm0, %v2477_v1 }
 0x3f6   :  { %2350 = vmatprep.subr.bf16.mxu1 %v2477_v1 }
 0x3f8   :  { %2335 = vmatmul.mubr.msk.bf16.vlgmr.msra.gmra.mrb[52].mxu0 %vm729_vm2, %v1360_v4 }
 0x3f9   :  { %2345 = vmatpush3.bf16.msra.mxu0 %v1610_v34  ;;  %2346 = vmatprep.mubr.msk.bf16.mxu0 %vm2478_vm0, %v2477_v1 }
 0x3fa   :  { %2356 = vmatprep.subr.bf16.mxu0 %v2477_v1 }
 0x3fc   :  { %2341 = vmatmul.mubr.msk.bf16.vlgmr.msra.gmra.mrb[52].mxu1 %vm729_vm2, %v1361_v12 }
 0x3fd   :  { %2351 = vmatpush3.bf16.msra.mxu1 %v1656_v39  ;;  %2352 = vmatprep.mubr.msk.bf16.mxu1 %vm2478_vm0, %v2477_v1 }
 0x3fe   :  { %2362 = vmatprep.subr.bf16.mxu1 %v2477_v1 }
 0x4b2   :  { %v1199_v18 = vpop.f32.mrb[40].mxu0 }
 0x4b3   :  { %v2300_v29 = vpop.f32.mrb[41].mxu0  ;;  %v1343_v35 = vsel %vm56_vm1, %v1199_v18, 0.0 }
 0x4b4   :  { %v1202_v30 = vpop.f32.mrb[42].mxu0 }
 0x4b5   :  { %v2301_v32 = vpop.f32.mrb[43].mxu0 }
 0x4b6   :  { %v1245_v33 = vpop.f32.mrb[40].mxu1 }
 0x4b7   :  { %v1344_v42 = vsel %vm56_vm1, %v1245_v33, 0.0  ;;  %v2306_v36 = vpop.f32.mrb[41].mxu1 }
 0x4b8   :  { %v1345_v37 = vadd.f32 %v1344_v42, %v1343_v35  ;;  %v1248_v38 = vpop.f32.mrb[42].mxu1 }
 0x4b9   :  { %v2307_v21 = vpop.f32.mrb[43].mxu1 }
 0x4ba   :  { %v1291_v40 = vpop.f32.mrb[44].mxu0 }
 0x4bb   :  { %v1346_v41 = vsel %vm56_vm1, %v1291_v40, 0.0  ;;  %v2312_v43 = vpop.f32.mrb[45].mxu0 }
 0x4bc   :  { %v1347_v22 = vadd.f32 %v1346_v41, %v1345_v37  ;;  %v1294_v44 = vpop.f32.mrb[46].mxu0  ;;  %v1368_v41 = vpack.c.bf16 %v2723_v25, %v2723_v25 }
 0x4bd   :  { %v2313_v45 = vpop.f32.mrb[47].mxu0 }
 0x4be   :  { %v1337_v46 = vpop.f32.mrb[44].mxu1 }
 0x4bf   :  { %v1348_v48 = vsel %vm56_vm1, %v1337_v46, 0.0  ;;  %v2318_v50 = vpop.f32.mrb[45].mxu1  ;;  %v1702_v46 = vsel %vm969_vm3, %v1368_v41, 0 }
 0x4c0   :  { %v1349_v51 = vadd.f32 %v1348_v48, %v1347_v22  ;;  %v1340_v52 = vpop.f32.mrb[46].mxu1  ;;  %v1369_v48 = vpack.c.bf16 %v2725_v26, %v2725_v26 }
 0x4c1   :  { %v2319_v54 = vpop.f32.mrb[47].mxu1  ;;  %v1794_v52 = vld [vmem:[%s2918_s4] sm:$0xf] }
 0x4c2   :  { %v1356_v55 = vadd.f32 %v2837_v47, %v1349_v51  ;;  %v1748_v54 = vsel %vm969_vm3, %v1369_v48, 0 }
 0x4c3   :  { %v1410_v56 = vpop.f32.mrb[48].mxu0 }
 0x4c4   :  { %1357 = vst.msk [vmem:[#allocation2] sm:$0xff] %vm56_vm1, %v1356_v55  ;;  %v1554_v57 = vmul.f32 0.35355338, %v1410_v56  ;;  %v2324_v58 = vpop.f32.mrb[49].mxu0  ;;  %v1802_v56 = vsel %vm969_vm3, %v1794_v52, 0 }
 0x4c5   :  { %v1413_v59 = vpop.f32.mrb[50].mxu0 }
 0x4c6   :  { %v2325_v60 = vpop.f32.mrb[51].mxu0  ;;  %v1558_v61 = vsel %vm729_vm2, %v1554_v57, -inf }
 0x4c7   :  { %v1456_v62 = vpop.f32.mrb[48].mxu1  ;;  %1559 = vmax.xlane.f32.xlu0 %v1558_v61  ;;  %v1795_v60 = vld [vmem:[%s2918_s4 + $0x4] sm:$0xf] }
 0x4c8   :  { %v1555_v0 = vmul.f32 0.35355338, %v1456_v62  ;;  %v2330_v2 = vpop.f32.mrb[49].mxu1  ;;  %v1848_v61 = vsel %vm969_vm3, %v1795_v60, 0  ;;  %v1796_v62 = vld [vmem:[%s2918_s4 + $0x8] sm:$0xf] }
 0x4c9   :  { %v1459_v3 = vpop.f32.mrb[50].mxu1 }
 0x4ca   :  { %v2331_v5 = vpop.f32.mrb[51].mxu1  ;;  %v1561_v6 = vsel %vm729_vm2, %v1555_v0, -inf }
 0x4cb   :  { %1562 = vmax.xlane.f32.xlu1 %v1561_v6  ;;  %v1502_v7 = vpop.f32.mrb[52].mxu0  ;;  %v1894_v5 = vsel %vm969_vm3, %v1796_v62, 0 }
 0x4cc   :  { %v1556_v8 = vmul.f32 0.35355338, %v1502_v7  ;;  %v2336_v9 = vpop.f32.mrb[53].mxu0  ;;  %v1797_v7 = vld [vmem:[%s2918_s4 + $0xc] sm:$0xf]  ;;  %s2479_s4 = smov [#allocation2]  }
 0x4cd   :  { %v1505_v10 = vpop.f32.mrb[54].mxu0  ;;  %s1996_s11 = sshll.u32 %s2479_s4, 4  ;;  %s1997_s11 = int_to_ptr.vmem [resolvable:$true] %s1996_s11 }
 0x4ce   :  { %v2337_v11 = vpop.f32.mrb[55].mxu0  ;;  %v1564_v13 = vsel %vm729_vm2, %v1556_v8, -inf  ;;  %s2453_s12 = scalar_lea.vmem %s1997_s11, 256  ;;  %p2458_p1 = scmp.lt.s32.totalorder %s1997_s11, %s1997_s11 }
 0x4cf   :  { %v1548_v14 = vpop.f32.mrb[52].mxu1  ;;  %1565 = vmax.xlane.f32.xlu0 %v1564_v13  ;;  %v1940_v13 = vsel %vm969_vm3, %v1797_v7, 0  ;;  %p2454_p0 = scmp.ne.s32.totalorder %s1997_s11, %s2453_s12  ;;  %p2459_p2 = scmp.lt.s32.totalorder %s2453_s12, %s2453_s12 }
 0x4d0   :  { %v1557_v49 = vmul.f32 0.35355338, %v1548_v14  ;;  %v2342_v15 = vpop.f32.mrb[53].mxu1 }
 0x4d1   :  { %v1551_v16 = vpop.f32.mrb[54].mxu1  ;;  %p2460_p3 = por %p2459_p2, %p2458_p1 }
 0x4d2   :  { %v2343_v17 = vpop.f32.mrb[55].mxu1  ;;  %v1567_v19 = vsel %vm729_vm2, %v1557_v49, -inf }
 0x4d3   :  { %1568 = vmax.xlane.f32.xlu1 %v1567_v19  ;;  %p2461_p4 = pnand %p2460_p3, %p2454_p0 }
 0x554   :  { %v1560_v20 = vpop.xlane.xlu0 %1559 }
 0x555   :  { %v1570_v53 = vsub.f32 %v1554_v57, %v1560_v20 }
 0x557   :  { %v1574_v23 = vmul.f32 1.442695, %v1570_v53 }
 0x558   :  { %v1563_v24 = vpop.xlane.xlu1 %1562 }
 0x559   :  { %2437 = vpow2.f32 %v1574_v23  ;;  %v1571_v63 = vsub.f32 %v1555_v0, %v1563_v24 }
 0x55b   :  { %v1576_v31 = vmul.f32 1.442695, %v1571_v63 }
 0x55c   :  { %v1566_v27 = vpop.xlane.xlu0 %1565 }
 0x55d   :  { %2439 = vpow2.f32 %v1576_v31  ;;  %v1572_v4 = vsub.f32 %v1556_v8, %v1566_v27 }
 0x55f   :  { %v1578_v34 = vmul.f32 1.442695, %v1572_v4 }
 0x560   :  { %v1569_v28 = vpop.xlane.xlu1 %1568 }
 0x561   :  { %2441 = vpow2.f32 %v1578_v34  ;;  %v1573_v12 = vsub.f32 %v1557_v49, %v1569_v28 }
 0x563   :  { %v2438_v39 = vpop.eup %2437  ;;  %v1580_v18 = vmul.f32 1.442695, %v1573_v12 }
 0x564   :  { %v1582_v29 = vsel %vm729_vm2, %v2438_v39, 0.0 }
 0x565   :  { %2443 = vpow2.f32 %v1580_v18  ;;  %1583 = vadd.xlane.f32.xlu0 %v1582_v29 }
 0x567   :  { %v2440_v30 = vpop.eup %2439 }
 0x568   :  { %v1585_v32 = vsel %vm729_vm2, %v2440_v30, 0.0 }
 0x569   :  { %1586 = vadd.xlane.f32.xlu1 %v1585_v32 }
 0x56b   :  { %v2442_v33 = vpop.eup %2441 }
 0x56c   :  { %v1588_v35 = vsel %vm729_vm2, %v2442_v33, 0.0 }
 0x56d   :  { %1589 = vadd.xlane.f32.xlu0 %v1588_v35 }
 0x56f   :  { %v2444_v42 = vpop.eup %2443 }
 0x570   :  { %v1591_v36 = vsel %vm729_vm2, %v2444_v42, 0.0 }
 0x571   :  { %1592 = vadd.xlane.f32.xlu1 %v1591_v36 }
 0x5f2   :  { %v1584_v37 = vpop.xlane.xlu0 %1583 }
 0x5f3   :  { %2445 = vrcp.f32 %v1584_v37 }
 0x5f6   :  { %v1587_v38 = vpop.xlane.xlu1 %1586 }
 0x5f7   :  { %2447 = vrcp.f32 %v1587_v38 }
 0x5fa   :  { %v1590_v21 = vpop.xlane.xlu0 %1589 }
 0x5fb   :  { %2449 = vrcp.f32 %v1590_v21 }
 0x5fd   :  { %v2446_v40 = vpop.eup %2445 }
 0x5fe   :  { %v1598_v43 = vmul.f32 %v2446_v40, %v2438_v39  ;;  %v1593_v22 = vpop.xlane.xlu1 %1592 }
 0x5ff   :  { %2451 = vrcp.f32 %v1593_v22 }
 0x600   :  { %v1602_v44 = vpack.c.bf16 %v1598_v43, %v1598_v43 }
 0x601   :  { %v2448_v45 = vpop.eup %2447 }
 0x602   :  { %v1599_v50 = vmul.f32 %v2448_v45, %v2440_v30  ;;  %2347 = vmatmul.mubr.msk.bf16.vlgmr.msra.gmra.mrb[56].mxu0 %vm729_vm2, %v1602_v44 }
 0x603   :  { %2357 = vmatpush3.bf16.msra.mxu0 %v1702_v46  ;;  %2358 = vmatprep.mubr.msk.bf16.mxu0 %vm2478_vm0, %v2477_v1 }
 0x604   :  { %v1603_v51 = vpack.c.bf16 %v1599_v50, %v1599_v50  ;;  %2368 = vmatprep.subr.bf16.mxu0 %v2477_v1 }
 0x605   :  { %v2450_v25 = vpop.eup %2449 }
 0x606   :  { %v1600_v55 = vmul.f32 %v2450_v25, %v2442_v33  ;;  %2353 = vmatmul.mubr.msk.bf16.vlgmr.msra.gmra.mrb[56].mxu1 %vm729_vm2, %v1603_v51 }
 0x607   :  { %2363 = vmatpush3.bf16.msra.mxu1 %v1748_v54  ;;  %2364 = vmatprep.mubr.msk.bf16.mxu1 %vm2478_vm0, %v2477_v1 }
 0x608   :  { %v1604_v26 = vpack.c.bf16 %v1600_v55, %v1600_v55  ;;  %2374 = vmatprep.subr.bf16.mxu1 %v2477_v1 }
 0x609   :  { %v2452_v57 = vpop.eup %2451 }
 0x60a   :  { %v1601_v58 = vmul.f32 %v2452_v57, %v2444_v42  ;;  %2359 = vmatmul.mubr.msk.bf16.vlgmr.msra.gmra.mrb[60].mxu0 %vm729_vm2, %v1604_v26 }
 0x60b   :  { %2369 = vmatpush3.bf16.msra.mxu0 %v1802_v56  ;;  %2370 = vmatprep.mubr.msk.bf16.mxu0 %vm2478_vm0, %v2477_v1 }
 0x60c   :  { %v1605_v59 = vpack.c.bf16 %v1601_v58, %v1601_v58  ;;  %2380 = vmatprep.subr.bf16.mxu0 %v2477_v1 }
 0x60e   :  { %2365 = vmatmul.mubr.msk.bf16.vlgmr.msra.gmra.mrb[60].mxu1 %vm729_vm2, %v1605_v59 }
 0x60f   :  { %2376 = vmatprep.mubr.msk.bf16.mxu1 %vm2478_vm0, %v2477_v1  ;;  %2375 = vmatpush3.bf16.msra.mxu1 %v1848_v61 }
 0x610   :  { %2386 = vmatprep.subr.bf16.mxu1 %v2477_v1 }
 0x6d5   :  { %v1646_v0 = vpop.f32.mrb[56].mxu0 }
 0x6d6   :  { %v1790_v2 = vpack.c.bf16 %v1646_v0, %v1646_v0  ;;  %v2348_v3 = vpop.f32.mrb[57].mxu0 }
 0x6d7   :  { %v1649_v6 = vpop.f32.mrb[58].mxu0 }
 0x6d8   :  { %v2349_v8 = vpop.f32.mrb[59].mxu0  ;;  %2371 = vmatmul.mubr.msk.bf16.vlgmr.msra.gmra.mrb[64].mxu0 %vm729_vm2, %v1790_v2 }
 0x6d9   :  { %v1692_v9 = vpop.f32.mrb[56].mxu1  ;;  %2381 = vmatpush3.bf16.msra.mxu0 %v1894_v5  ;;  %2382 = vmatprep.mubr.msk.bf16.mxu0 %vm2478_vm0, %v2477_v1 }
 0x6da   :  { %v1791_v10 = vpack.c.bf16 %v1692_v9, %v1692_v9  ;;  %v2354_v11 = vpop.f32.mrb[57].mxu1 }
 0x6db   :  { %v1695_v14 = vpop.f32.mrb[58].mxu1 }
 0x6dc   :  { %v2355_v49 = vpop.f32.mrb[59].mxu1  ;;  %2377 = vmatmul.mubr.msk.bf16.vlgmr.msra.gmra.mrb[64].mxu1 %vm729_vm2, %v1791_v10 }
 0x6dd   :  { %v1738_v15 = vpop.f32.mrb[60].mxu0  ;;  %2387 = vmatpush3.bf16.msra.mxu1 %v1940_v13  ;;  %2388 = vmatprep.mubr.msk.bf16.mxu1 %vm2478_vm0, %v2477_v1 }
 0x6de   :  { %v1792_v16 = vpack.c.bf16 %v1738_v15, %v1738_v15  ;;  %v2360_v17 = vpop.f32.mrb[61].mxu0 }
 0x6df   :  { %v1741_v19 = vpop.f32.mrb[62].mxu0 }
 0x6e0   :  { %v2361_v20 = vpop.f32.mrb[63].mxu0  ;;  %2383 = vmatmul.mubr.msk.bf16.vlgmr.msra.gmra.mrb[68].mxu0 %vm729_vm2, %v1792_v16 }
 0x6e1   :  { %v1784_v53 = vpop.f32.mrb[60].mxu1 }
 0x6e2   :  { %v1793_v23 = vpack.c.bf16 %v1784_v53, %v1784_v53  ;;  %v2366_v24 = vpop.f32.mrb[61].mxu1 }
 0x6e3   :  { %v1787_v63 = vpop.f32.mrb[62].mxu1 }
 0x6e4   :  { %v2367_v31 = vpop.f32.mrb[63].mxu1  ;;  %2389 = vmatmul.mubr.msk.bf16.vlgmr.msra.gmra.mrb[68].mxu1 %vm729_vm2, %v1793_v23 }
 0x7ab   :  { %v1838_v27 = vpop.f32.mrb[64].mxu0 }
 0x7ac   :  { %v2372_v4 = vpop.f32.mrb[65].mxu0  ;;  %v1982_v1 = vsel %vm56_vm1, %v1838_v27, 0.0 }
 0x7ad   :  { %v1841_v34 = vpop.f32.mrb[66].mxu0 }
 0x7ae   :  { %v2373_v28 = vpop.f32.mrb[67].mxu0 }
 0x7af   :  { %v1884_v12 = vpop.f32.mrb[64].mxu1 }
 0x7b0   :  { %v1983_v39 = vsel %vm56_vm1, %v1884_v12, 0.0  ;;  %v2378_v18 = vpop.f32.mrb[65].mxu1 }
 0x7b1   :  { %v1984_v29 = vadd.f32 %v1983_v39, %v1982_v1  ;;  %v1887_v30 = vpop.f32.mrb[66].mxu1 }
 0x7b2   :  { %v2379_v32 = vpop.f32.mrb[67].mxu1 }
 0x7b3   :  { %v1930_v33 = vpop.f32.mrb[68].mxu0 }
 0x7b4   :  { %v1985_v35 = vsel %vm56_vm1, %v1930_v33, 0.0  ;;  %v2384_v42 = vpop.f32.mrb[69].mxu0 }
 0x7b5   :  { %v1986_v36 = vadd.f32 %v1985_v35, %v1984_v29  ;;  %v1933_v37 = vpop.f32.mrb[70].mxu0 }
 0x7b6   :  { %v2385_v38 = vpop.f32.mrb[71].mxu0 }
 0x7b7   :  { %v1976_v21 = vpop.f32.mrb[68].mxu1 }
 0x7b8   :  { %v1987_v40 = vsel %vm56_vm1, %v1976_v21, 0.0  ;;  %v2390_v41 = vpop.f32.mrb[69].mxu1 }
 0x7b9   :  { %v1988_v43 = vadd.f32 %v1987_v40, %v1986_v36  ;;  %v1979_v22 = vpop.f32.mrb[70].mxu1 }
 0x7ba   :  { %v2391_v44 = vpop.f32.mrb[71].mxu1 }
 0x7bb   :  { %v1989_v45 = vadd.f32 %v2837_v47, %v1988_v43 }
 0x7bd   :  { %1990 = vst.msk [vmem:[#allocation2 + $0x8] sm:$0xff] %vm56_vm1, %v1989_v45 }
 0x7be   :  { %2464 = shalt.err (!%p2461_p4)
}
 0x7bf   :  { %s2465_s14 = scalar_lea.hbm %s2920_s6, 256 }
 0x7c0   :  { %p2466_p5 = scmp.ne.s32.totalorder %s2920_s6, %s2465_s14  ;;  %p2469_p6 = scmp.lt.u32.totalorder %s2465_s14, %s2920_s6 }
 0x7c2   :  { %p2471_p7 = pnand %p2469_p6, %p2466_p5 }
 0x7c4   :  { %2474 = shalt.err (!%p2471_p7)
}
 0x7c5   :  { %s2480_s19 = smov 128   ;;  %s2481_s1 = smov 8  }
 0x7c6   :  { %2002 = dma.vmem_to_hbm [thread:$0]  %s1997_s11, 256, %s2920_s6, [#allocation3], %s2480_s19, %s2480_s19, %s2481_s1  }
 0x7c7   :  { %2475 = dma.done.wait [#allocation3], 256  }
 0x7c8   :  { %2476 = vsyncadd [#allocation3], 4294967040 }
 0x7c9   :  { %2006 = vsyncpa [#allocation3], 1 }

</bundles_post_ra>
